<compile_context>
chip_gen: v7x
topology: tpu7x:2x2x1
jax: 0.10.0
libtpu: 0.0.40
codegen_flags: <defaults>
</compile_context>

<pallas_src>
import functools

import jax
import jax.numpy as jnp
import numpy as np
from jax.experimental import pallas as pl
from jax.experimental.pallas import tpu as pltpu


# ----------------------------------------------------------------------------
# Adaptive average pooling expressed as matrices (PyTorch AdaptiveAvgPool2d bins)
# ----------------------------------------------------------------------------
def _pool_matrix(size, k):
    """(size, k): column i averages bin [floor(i*size/k), ceil((i+1)*size/k))."""
    m = np.zeros((size, k), dtype=np.float32)
    for i in range(k):
        start = (i * size) // k
        end = -((-(i + 1) * size) // k)
        m[start:end, i] = 1.0 / (end - start)
    return m


def _pool_matrix_2d(h, w, k):
    ph = _pool_matrix(h, k)          # (H, k)
    pw = _pool_matrix(w, k)          # (W, k)
    return np.einsum("hi,wj->hwij", ph, pw).reshape(h * w, k * k).astype(np.float32)


def _pool_block_diag_tapmajor(h, w, k, bs):
    """(bs*HW, k*k*bs): column j*bs + b pools sample b's span with tap j."""
    p = _pool_matrix_2d(h, w, k)     # (HW, kk)
    hw, kk = p.shape
    out = np.zeros((bs * hw, kk * bs), np.float32)
    for b in range(bs):
        out[b * hw:(b + 1) * hw, b::bs] = p
    return out


# ----------------------------------------------------------------------------
# Probe pltpu.roll's shift convention once (tiny one-off kernel, cached).
# Returns sgn so that pltpu.roll(x, (sgn * t) % n, axis) == jnp.roll(x, t, axis).
# ----------------------------------------------------------------------------
@functools.lru_cache(maxsize=None)
def _roll_sign():
    def probe(x_ref, o_ref):
        o_ref[...] = pltpu.roll(x_ref[...], 1, 1)

    x = jax.lax.broadcasted_iota(jnp.float32, (8, 128), 1)
    out = pl.pallas_call(
        probe, out_shape=jax.ShapeDtypeStruct((8, 128), jnp.float32))(x)
    # jnp.roll convention: out[0,1] == x[0,0] == 0 ; opposite: out[0,1] == 2
    return 1 if float(np.asarray(out)[0, 1]) == 0.0 else -1


# ----------------------------------------------------------------------------
# Fully fused IntegratedDCM2d forward (single pallas_call)
# ----------------------------------------------------------------------------
def _pick_samples_per_step(n, hw):
    """Largest divisor of n keeping >=2 grid steps (v7x: 2 TCs) and a moderate
    per-step lane extent."""
    best = 1
    for b in range(1, n + 1):
        if n % b == 0 and (n // b) >= min(2, n) and b * hw <= 2048:
            best = b
    return best


def integrated_dcm2d_forward(x, params, ks):
    per_k_params, (w_out, b_out) = params
    N, Cin, H, W = x.shape
    HW = H * W
    Cout = w_out.shape[0]
    n_br = len(ks)
    roll_sign = _roll_sign()

    B = _pick_samples_per_step(N, HW)
    n_steps = N // B
    BHW = B * HW

    # ---- lane-dense channels-first layout; Cin padded to a sublane multiple --
    Cin_p = max(8, ((Cin + 7) // 8) * 8)
    x_t = jnp.transpose(x.reshape(N, Cin, HW), (1, 0, 2)).reshape(Cin, N * HW)
    x_t = jnp.pad(x_t, ((0, Cin_p - Cin), (0, 0)))

    def pad_cin(w):  # (Cout, Cin) -> (Cout, Cin_p); zero cols contribute 0
        return jnp.pad(w, ((0, 0), (0, Cin_p - Cin)))

    # ---- constants: per-sample-span selector + spatial index maps -----------
    sel_np = np.zeros((B, BHW), np.float32)
    for b in range(B):
        sel_np[b, b * HW:(b + 1) * HW] = 1.0
    lane = np.arange(BHW, dtype=np.int32)
    h_idx_np = ((lane % HW) // W).astype(np.int32)[None, :]
    w_idx_np = (lane % W).astype(np.int32)[None, :]
    sel = jnp.asarray(sel_np)
    h_idx = jnp.asarray(h_idx_np)
    w_idx = jnp.asarray(w_idx_np)

    # ---- per-branch operands (weights + pooling matrices + outTrans slices) --
    branch_ops = []
    for bi, (k, prm) in enumerate(zip(ks, per_k_params)):
        w_up, b_up, w_down, b_down, w_fin, b_fin = prm
        pool_bd = jnp.asarray(_pool_block_diag_tapmajor(H, W, k, B))
        w_out_k = w_out[:, bi * Cout:(bi + 1) * Cout]
        branch_ops += [pad_cin(w_up), b_up.reshape(Cout, 1),
                       pad_cin(w_down), b_down.reshape(Cout, 1),
                       w_fin, b_fin.reshape(Cout, 1),
                       pool_bd, w_out_k]
    w_x = pad_cin(w_out[:, n_br * Cout:])
    b_o = b_out.reshape(Cout, 1)

    # ---- the fused kernel -----------------------------------------------------
    def kernel(*refs):
        x_ref, sel_ref, h_ref, wi_ref = refs[0], refs[1], refs[2], refs[3]
        br = refs[4:4 + 8 * n_br]
        wx_ref = refs[4 + 8 * n_br]
        bo_ref = refs[5 + 8 * n_br]
        o_ref = refs[6 + 8 * n_br]

        xb = x_ref[...]                       # (Cin_p, BHW)
        sel_v = sel_ref[...]                  # (B, BHW)
        h_v = h_ref[...]                      # (1, BHW) int32
        w_v = wi_ref[...]                     # (1, BHW) int32

        # outTrans: x passthrough + bias, accumulated fully in-register.
        out_acc = (jnp.dot(wx_ref[...], xb, preferred_element_type=jnp.float32)
                   + bo_ref[...])             # (Cout, BHW)

        for bi, k in enumerate(ks):
            wup, bup, wdn, bdn, wfin, bfin, pool, wok = br[8 * bi:8 * bi + 8]
            p = (k - 1) // 2

            # up branch: 1x1 conv, one lane-dense matmul over all B samples.
            up = (jnp.dot(wup[...], xb, preferred_element_type=jnp.float32)
                  + bup[...])                 # (Cout, BHW)

            # down branch: adaptive avg-pool (block-diag matmul) + 1x1 conv.
            pooled = jnp.dot(xb, pool[...],
                             preferred_element_type=jnp.float32)   # (Cin_p, kk*B)
            filt = (jnp.dot(wdn[...], pooled,
                            preferred_element_type=jnp.float32)
                    + bdn[...])               # (Cout, kk*B), tap-major columns

            # dynamic depthwise conv: per-tap roll (XLU) + mask + FMA (VPU).
            acc = None
            for kh in range(k):
                for kw in range(k):
                    dh, dw = kh - p, kw - p
                    s = dh * W + dw
                    if s == 0:
                        rolled = up
                    else:
                        rolled = pltpu.roll(up, (roll_sign * (-s)) % BHW, 1)
                    j = kh * k + kw
                    if B == 1:
                        scale = filt[:, j:j + 1]            # (Cout,1) broadcast
                    else:
                        scale = jnp.dot(filt[:, j * B:(j + 1) * B], sel_v,
                                        preferred_element_type=jnp.float32)
                    term = rolled * scale
                    conds = []
                    if dh < 0:
                        conds.append(h_v >= -dh)
                    if dh > 0:
                        conds.append(h_v < H - dh)
                    if dw < 0:
                        conds.append(w_v >= -dw)
                    if dw > 0:
                        conds.append(w_v < W - dw)
                    if conds:
                        m = conds[0]
                        for c in conds[1:]:
                            m = jnp.logical_and(m, c)
                        term = jnp.where(m, term, 0.0)
                    acc = term if acc is None else acc + term

            # final 1x1 conv + this branch's slice of the outTrans 1x1 conv.
            y = (jnp.dot(wfin[...], acc, preferred_element_type=jnp.float32)
                 + bfin[...])
            out_acc = out_acc + jnp.dot(wok[...], y,
                                        preferred_element_type=jnp.float32)

        o_ref[...] = out_acc                  # single full-block lane-dense store

    # ---- specs ---------------------------------------------------------------
    def const_spec(arr):
        nd = arr.ndim
        return pl.BlockSpec(tuple(arr.shape), lambda i, _nd=nd: (0,) * _nd)

    in_arrays = [x_t, sel, h_idx, w_idx] + branch_ops + [w_x, b_o]
    in_specs = ([pl.BlockSpec((Cin_p, BHW), lambda i: (0, i))]
                + [const_spec(a) for a in in_arrays[1:]])

    out = pl.pallas_call(
        kernel,
        grid=(n_steps,),
        in_specs=in_specs,
        out_specs=pl.BlockSpec((Cout, BHW), lambda i: (0, i)),
        out_shape=jax.ShapeDtypeStruct((Cout, N * HW), jnp.float32),
        compiler_params=pltpu.CompilerParams(
            dimension_semantics=("parallel",)),
    )(*in_arrays)

    return jnp.transpose(out.reshape(Cout, N, HW), (1, 0, 2)).reshape(N, Cout, H, W)


# ----------------------------------------------------------------------------
# Pure numpy reference (mirrors PyTorch semantics) for verification
# ----------------------------------------------------------------------------
def _ref_forward_np(x, params, ks):
    x = np.asarray(x, np.float32)
    per_k_params, (w_out, b_out) = params
    n, cin, H, W = x.shape
    outs = []
    for k, prm in zip(ks, per_k_params):
        w_up, b_up, w_down, b_down, w_fin, b_fin = [np.asarray(p, np.float32) for p in prm]
        cout = w_up.shape[0]
        up = np.einsum("oc,nchw->nohw", w_up, x) + b_up[None, :, None, None]

        def bins(s):
            return [((i * s) // k, -((-(i + 1) * s) // k)) for i in range(k)]

        pooled = np.zeros((n, cin, k, k), np.float32)
        for i, (hs, he) in enumerate(bins(H)):
            for j, (ws, we) in enumerate(bins(W)):
                pooled[:, :, i, j] = x[:, :, hs:he, ws:we].mean(axis=(2, 3))
        down = np.einsum("oc,ncij->noij", w_down, pooled) + b_down[None, :, None, None]

        p = (k - 1) // 2
        up_pad = np.pad(up, ((0, 0), (0, 0), (p, p), (p, p)))
        dyn = np.zeros((n, cout, H, W), np.float32)
        for kh in range(k):
            for kw in range(k):
                dyn += (up_pad[:, :, kh:kh + H, kw:kw + W]
                        * down[:, :, kh:kh + 1, kw:kw + 1])
        out_k = np.einsum("oc,nchw->nohw", w_fin, dyn) + b_fin[None, :, None, None]
        outs.append(out_k)
    outs.append(x)
    cat = np.concatenate(outs, axis=1)
    w_out = np.asarray(w_out, np.float32)
    b_out = np.asarray(b_out, np.float32)
    return np.einsum("oc,nchw->nohw", w_out, cat) + b_out[None, :, None, None]


# ----------------------------------------------------------------------------
if __name__ == "__main__":
    N, CIN, COUT = 2, 4, 8
    H = W = 16
    KS = (1, 3, 5)

    _ = _roll_sign()   # prime the roll-convention probe outside jit tracing

    key = jax.random.PRNGKey(0)
    keys = jax.random.split(key, 1 + len(KS) * 6 + 2)
    x = jax.random.normal(keys[0], (N, CIN, H, W), jnp.float32)

    per_k_params = []
    ki = 1
    for k in KS:
        w_up = 0.2 * jax.random.normal(keys[ki + 0], (COUT, CIN), jnp.float32)
        b_up = 0.1 * jax.random.normal(keys[ki + 1], (COUT,), jnp.float32)
        w_down = 0.2 * jax.random.normal(keys[ki + 2], (COUT, CIN), jnp.float32)
        b_down = 0.1 * jax.random.normal(keys[ki + 3], (COUT,), jnp.float32)
        w_fin = 0.2 * jax.random.normal(keys[ki + 4], (COUT, COUT), jnp.float32)
        b_fin = 0.1 * jax.random.normal(keys[ki + 5], (COUT,), jnp.float32)
        per_k_params.append((w_up, b_up, w_down, b_down, w_fin, b_fin))
        ki += 6
    w_out = 0.2 * jax.random.normal(keys[ki], (COUT, COUT * len(KS) + CIN), jnp.float32)
    b_out = 0.1 * jax.random.normal(keys[ki + 1], (COUT,), jnp.float32)
    params = (tuple(per_k_params), (w_out, b_out))

    fwd = jax.jit(functools.partial(integrated_dcm2d_forward, ks=KS))
    out = jax.block_until_ready(fwd(x, params))

    ref = _ref_forward_np(np.asarray(x), params, KS)
    assert out.shape == (N, COUT, H, W), out.shape
    np.testing.assert_allclose(np.asarray(out), ref, rtol=2e-4, atol=2e-4)

    print("KERNEL_OK")
</pallas_src>

<mosaic_0001>
module attributes {stable_mosaic.version = 11 : i64} {
  func.func @probe(%arg0: memref<8x128xf32, #tpu.memory_space<vmem>>, %arg1: memref<8x128xf32, #tpu.memory_space<vmem>>) attributes {dimension_semantics = [], scalar_prefetch = 0 : i64, scratch_operands = 0 : i64, tpu.core_type = #tpu.core_type<tc>} {
    %c0 = arith.constant 0 : index
    %c0_0 = arith.constant 0 : index
    %0 = vector.load %arg0[%c0, %c0_0] : memref<8x128xf32, #tpu.memory_space<vmem>>, vector<8x128xf32>
    %c1_i32 = arith.constant 1 : i32
    %1 = tpu.dynamic_rotate %0 by %c1_i32 dim 1 : vector<8x128xf32>, i32 -> vector<8x128xf32>
    %c0_1 = arith.constant 0 : index
    %c0_2 = arith.constant 0 : index
    %2 = vector.load %arg1[%c0_1, %c0_2] : memref<8x128xf32, #tpu.memory_space<vmem>>, vector<8x128xf32>
    tpu.vector_store %arg1[%c0_1, %c0_2], %1 {strides = array<i32>} : memref<8x128xf32, #tpu.memory_space<vmem>>, vector<8x128xf32>,
    return
  }
}

</mosaic_0001>

<bundles_post_ra>
// kernel: tpu_custom_call.1
= control target key start
LH: loop header
LB: loop body
LE: loop exit
PB: predicated region body
PF: predicated region fallthrough
CT: control target
= control target key end

     0   :  { %6 = vsyncpa [#allocation3], 0  ;;  %s128_s0 = inlined_call_operand.hbm [shape: f32[8,128], index: 0, kind: input, shape index: {}]   ;;  %s129_s1 = inlined_call_operand.hbm [shape: f32[8,128], index: 1, kind: output, shape index: {}]  }
   0x1   :  { %7 = vsyncpa [#allocation4], 0  ;;  %s91_s6 = smov [#allocation2]   ;;  %s43_s10 = scalar_lea.hbm %s128_s0, 128 }
   0x2   :  { %s14_s7 = sshll.u32 %s91_s6, 4  ;;  %p44_p0 = scmp.ne.s32.totalorder %s128_s0, %s43_s10  ;;  %s15_s7 = int_to_ptr.vmem [resolvable:$true] %s14_s7 }
   0x3   :  { %p47_p1 = scmp.lt.u32.totalorder %s43_s10, %s128_s0 }
   0x5   :  { %p49_p2 = pnand %p47_p1, %p44_p0 }
   0x7   :  { %52 = shalt.err (!%p49_p2)
}
   0x8   :  { %s53_s15 = scalar_lea.vmem %s15_s7, 128  ;;  %p58_p4 = scmp.lt.s32.totalorder %s15_s7, %s15_s7 }
   0x9   :  { %p54_p3 = scmp.ne.s32.totalorder %s15_s7, %s53_s15  ;;  %p59_p5 = scmp.lt.s32.totalorder %s53_s15, %s53_s15 }
   0xb   :  { %p60_p6 = por %p59_p5, %p58_p4 }
   0xd   :  { %p61_p7 = pnand %p60_p6, %p54_p3 }
   0xf   :  { %64 = shalt.err (!%p61_p7)
}
  0x10   :  { %17 = dma.hbm_to_vmem [thread:$0]  %s128_s0, 128, %s15_s7, [#allocation3]  }
  0x11   :  { %87 = dma.done.wait [#allocation3], 128  }
  0x12   :  { %88 = vsyncadd [#allocation3], 4294967168  ;;  %v21_v0 = vld [vmem:[#allocation2] sm:$0xff]  ;;  %s92_s18 = smov 1   ;;  %s93_s19 = smov [#allocation5]  }
  0x13   :  { %22 = vrot.lane.b32.xlu0 %v21_v0, %s92_s18  ;;  %s31_s20 = sshll.u32 %s93_s19, 4  ;;  %s32_s20 = int_to_ptr.vmem [resolvable:$true] %s31_s20 }
  0x14   :  { %s65_s21 = scalar_lea.vmem %s32_s20, 128  ;;  %p70_p9 = scmp.lt.s32.totalorder %s32_s20, %s32_s20 }
  0x15   :  { %p66_p8 = scmp.ne.s32.totalorder %s32_s20, %s65_s21  ;;  %p71_p10 = scmp.lt.s32.totalorder %s65_s21, %s65_s21 }
  0x17   :  { %p72_p11 = por %p71_p10, %p70_p9 }
  0x19   :  { %p73_p12 = pnand %p72_p11, %p66_p8 }
  0x85   :  { %v23_v1 = vpop.permute.xlu0 %22 }
  0x86   :  { %24 = vst [vmem:[#allocation5] sm:$0xff] %v23_v1 }
  0x87   :  { %76 = shalt.err (!%p73_p12)
}
  0x88   :  { %s77_s0 = scalar_lea.hbm %s129_s1, 128 }
  0x89   :  { %p78_p13 = scmp.ne.s32.totalorder %s129_s1, %s77_s0  ;;  %p81_p0 = scmp.lt.u32.totalorder %s77_s0, %s129_s1 }
  0x8b   :  { %p83_p1 = pnand %p81_p0, %p78_p13 }
  0x8d   :  { %86 = shalt.err (!%p83_p1)
}
  0x8e   :  { %34 = dma.vmem_to_hbm [thread:$0]  %s32_s20, 128, %s129_s1, [#allocation4]  }
  0x8f   :  { %89 = dma.done.wait [#allocation4], 128  }
  0x90   :  { %90 = vsyncadd [#allocation4], 4294967168 }
  0x91   :  { %38 = vsyncpa [#allocation3], 1 }
  0x92   :  { %39 = vsyncpa [#allocation4], 1 }

</bundles_post_ra>
